<compile_context>
chip_gen: v5e
topology: v5e:2x2
jax: 0.10.0
libtpu: 0.0.40
codegen_flags: <defaults>
</compile_context>

<pallas_src>
import functools

import jax
import jax.numpy as jnp
from jax.experimental import pallas as pl
from jax.experimental.pallas import tpu as pltpu

TEMPERATURE = 0.07
COS_EPS = 1e-8  # matches torch.nn.CosineSimilarity default eps

# 3 input streams x 2 pipeline buffers x tile bytes kept under this budget
# (fits the 16 MiB v5e scoped default headroom-free; we raise the limit to 32 MiB anyway).
_VMEM_INPUT_BUDGET_BYTES = 16 * 1024 * 1024


def _pick_tile_b(B, D, itemsize):
    max_rows = max(8, _VMEM_INPUT_BUDGET_BYTES // (3 * 2 * D * itemsize))
    if B <= 8:
        return B  # block equals full batch dim; no (8,128) issue
    tile = min(B, max_rows)
    return max(8, (tile // 8) * 8)


def _contrastive_loss_kernel(f1_ref, f2_ref, fn_ref, out_ref, acc_ref,
                             *, batch, tile_b, inv_temp):
    i = pl.program_id(0)

    @pl.when(i == 0)
    def _init():
        acc_ref[...] = jnp.zeros_like(acc_ref)

    # Stream tiles in native dtype, compute in f32 (mandatory on v5e; cheap elsewhere).
    f1 = f1_ref[...].astype(jnp.float32)
    f2 = f2_ref[...].astype(jnp.float32)
    fn = fn_ref[...].astype(jnp.float32)

    # Row-wise reductions over the feature (lane) axis: VPU multiplies + XLU reduces.
    dot_pos = jnp.sum(f1 * f2, axis=-1, keepdims=True)   # [tile_b, 1]
    dot_neg = jnp.sum(f1 * fn, axis=-1, keepdims=True)
    s1 = jnp.sum(f1 * f1, axis=-1, keepdims=True)
    s2 = jnp.sum(f2 * f2, axis=-1, keepdims=True)
    sn = jnp.sum(fn * fn, axis=-1, keepdims=True)

    # cos = dot / max(||a||*||b||, eps)  ==  dot * rsqrt(max(s_a*s_b, eps^2))
    eps2 = jnp.float32(COS_EPS * COS_EPS)
    cos_pos = dot_pos * jax.lax.rsqrt(jnp.maximum(s1 * s2, eps2))
    cos_neg = dot_neg * jax.lax.rsqrt(jnp.maximum(s1 * sn, eps2))

    # CE with label 0 over [pos, neg]/T  ==  softplus((neg - pos)/T), stable form.
    z = (cos_neg - cos_pos) * jnp.float32(inv_temp)
    per_row = jnp.maximum(z, 0.0) + jnp.log(1.0 + jnp.exp(-jnp.abs(z)))  # [tile_b, 1]

    # Mask rows past the true batch size (last tile may be padded with garbage).
    row = i * tile_b + jax.lax.broadcasted_iota(jnp.int32, per_row.shape, 0)
    per_row = jnp.where(row < batch, per_row, 0.0)

    acc_ref[...] += jnp.sum(per_row, axis=0, keepdims=True)  # (1, 1)

    @pl.when(i == pl.num_programs(0) - 1)
    def _finalize():
        out_ref[...] = acc_ref[...] * jnp.float32(1.0 / batch)


def contrastive_loss(features1, features2, negative_features,
                     temperature=TEMPERATURE, tile_b=None):
    B, D = features1.shape
    if tile_b is None:
        tile_b = _pick_tile_b(B, D, jnp.dtype(features1.dtype).itemsize)
    num_tiles = pl.cdiv(B, tile_b)

    kernel = functools.partial(
        _contrastive_loss_kernel,
        batch=B, tile_b=tile_b, inv_temp=1.0 / temperature,
    )
    in_spec = pl.BlockSpec((tile_b, D), lambda i: (i, 0))

    out = pl.pallas_call(
        kernel,
        out_shape=jax.ShapeDtypeStruct((1, 1), jnp.float32),
        grid=(num_tiles,),
        in_specs=[in_spec, in_spec, in_spec],
        out_specs=pl.BlockSpec((1, 1), lambda i: (0, 0)),
        scratch_shapes=[pltpu.VMEM((1, 1), jnp.float32)],
        compiler_params=pltpu.CompilerParams(
            dimension_semantics=("arbitrary",),      # reduction axis (resident accumulator)
            vmem_limit_bytes=32 * 1024 * 1024,
        ),
    )(features1, features2, negative_features)
    return out[0, 0]


def contrastive_loss_ref(f1, f2, fn, temperature=TEMPERATURE):
    # Pure-JAX reference mirroring the PyTorch module.
    def cos(a, b):
        num = jnp.sum(a * b, axis=-1)
        den = jnp.maximum(
            jnp.linalg.norm(a, axis=-1) * jnp.linalg.norm(b, axis=-1), COS_EPS
        )
        return num / den

    pos = cos(f1, f2)[:, None]
    neg = cos(f1, fn)[:, None]
    logits = jnp.concatenate([pos, neg], axis=-1) / temperature
    lse = jax.scipy.special.logsumexp(logits, axis=-1)
    return jnp.mean(lse - logits[:, 0])


if __name__ == "__main__":
    # Case 1: the module's nominal small shape [batch=8, feature_dim=32].
    key = jax.random.PRNGKey(0)
    k1, k2, k3 = jax.random.split(key, 3)
    B, D = 8, 32
    features1 = jax.random.normal(k1, (B, D), dtype=jnp.float32)
    features2 = jax.random.normal(k2, (B, D), dtype=jnp.float32)
    negative_features = jax.random.normal(k3, (B, D), dtype=jnp.float32)

    loss = contrastive_loss(features1, features2, negative_features)
    jax.block_until_ready(loss)
    ref = contrastive_loss_ref(features1, features2, negative_features)
    assert jnp.allclose(loss, ref, rtol=1e-5, atol=1e-5), (loss, ref)

    # Case 2: exercise the multi-tile grid + ragged-batch masking path (B=20, tile=8).
    k4, k5, k6 = jax.random.split(jax.random.PRNGKey(1), 3)
    B2 = 20
    g1 = jax.random.normal(k4, (B2, D), dtype=jnp.float32)
    g2 = jax.random.normal(k5, (B2, D), dtype=jnp.float32)
    gn = jax.random.normal(k6, (B2, D), dtype=jnp.float32)

    loss2 = contrastive_loss(g1, g2, gn, tile_b=8)
    jax.block_until_ready(loss2)
    ref2 = contrastive_loss_ref(g1, g2, gn)
    assert jnp.allclose(loss2, ref2, rtol=1e-5, atol=1e-5), (loss2, ref2)

    print("KERNEL_OK")
</pallas_src>

<mosaic_0001>
module attributes {stable_mosaic.version = 11 : i64} {
  func.func @_contrastive_loss_kernel(%arg0: i32, %arg1: memref<8x32xf32, #tpu.memory_space<vmem>>, %arg2: memref<8x32xf32, #tpu.memory_space<vmem>>, %arg3: memref<8x32xf32, #tpu.memory_space<vmem>>, %arg4: memref<1x1xf32, #tpu.memory_space<vmem>>, %arg5: memref<1x1xf32, #tpu.memory_space<vmem>>) attributes {dimension_semantics = [#tpu.dimension_semantics<arbitrary>], iteration_bounds = array<i64: 1>, scalar_prefetch = 0 : i64, scratch_operands = 1 : i64, tpu.core_type = #tpu.core_type<tc>, window_params = [{transform_indices = @transform_0, window_bounds = array<i64: 8, 32>}, {transform_indices = @transform_1, window_bounds = array<i64: 8, 32>}, {transform_indices = @transform_2, window_bounds = array<i64: 8, 32>}, {pipeline_mode = #tpu.pipeline_mode<synchronous>, transform_indices = @transform_3, window_bounds = array<i64: 1, 1>}]} {
    %c0_i32 = arith.constant 0 : i32
    %0 = arith.cmpi eq, %arg0, %c0_i32 : i32
    %1 = arith.extui %0 : i1 to i32
    %c0_i32_0 = arith.constant 0 : i32
    %2 = arith.cmpi ne, %1, %c0_i32_0 : i32
    scf.if %2 {
      %cst_25 = arith.constant 0.000000e+00 : f32
      %60 = vector.broadcast %cst_25 : f32 to vector<1x1xf32>
      %c0_26 = arith.constant 0 : index
      %c0_27 = arith.constant 0 : index
      %61 = vector.load %arg5[%c0_26, %c0_27] : memref<1x1xf32, #tpu.memory_space<vmem>>, vector<1x1xf32>
      tpu.vector_store %arg5[%c0_26, %c0_27], %60 {strides = array<i32>} : memref<1x1xf32, #tpu.memory_space<vmem>>, vector<1x1xf32>,
    } else {
    }
    %c0 = arith.constant 0 : index
    %c0_1 = arith.constant 0 : index
    %3 = vector.load %arg1[%c0, %c0_1] : memref<8x32xf32, #tpu.memory_space<vmem>>, vector<8x32xf32>
    %c0_2 = arith.constant 0 : index
    %c0_3 = arith.constant 0 : index
    %4 = vector.load %arg2[%c0_2, %c0_3] : memref<8x32xf32, #tpu.memory_space<vmem>>, vector<8x32xf32>
    %c0_4 = arith.constant 0 : index
    %c0_5 = arith.constant 0 : index
    %5 = vector.load %arg3[%c0_4, %c0_5] : memref<8x32xf32, #tpu.memory_space<vmem>>, vector<8x32xf32>
    %6 = arith.mulf %3, %4 : vector<8x32xf32>
    %cst = arith.constant dense<0.000000e+00> : vector<8xf32>
    %7 = vector.multi_reduction <add>, %6, %cst [1] : vector<8x32xf32> to vector<8xf32>
    %8 = vector.shape_cast %7 : vector<8xf32> to vector<8x1xf32>
    %9 = arith.mulf %3, %5 : vector<8x32xf32>
    %cst_6 = arith.constant dense<0.000000e+00> : vector<8xf32>
    %10 = vector.multi_reduction <add>, %9, %cst_6 [1] : vector<8x32xf32> to vector<8xf32>
    %11 = vector.shape_cast %10 : vector<8xf32> to vector<8x1xf32>
    %12 = arith.mulf %3, %3 : vector<8x32xf32>
    %cst_7 = arith.constant dense<0.000000e+00> : vector<8xf32>
    %13 = vector.multi_reduction <add>, %12, %cst_7 [1] : vector<8x32xf32> to vector<8xf32>
    %14 = vector.shape_cast %13 : vector<8xf32> to vector<8x1xf32>
    %15 = arith.mulf %4, %4 : vector<8x32xf32>
    %cst_8 = arith.constant dense<0.000000e+00> : vector<8xf32>
    %16 = vector.multi_reduction <add>, %15, %cst_8 [1] : vector<8x32xf32> to vector<8xf32>
    %17 = vector.shape_cast %16 : vector<8xf32> to vector<8x1xf32>
    %18 = arith.mulf %5, %5 : vector<8x32xf32>
    %cst_9 = arith.constant dense<0.000000e+00> : vector<8xf32>
    %19 = vector.multi_reduction <add>, %18, %cst_9 [1] : vector<8x32xf32> to vector<8xf32>
    %20 = vector.shape_cast %19 : vector<8xf32> to vector<8x1xf32>
    %21 = arith.mulf %14, %17 : vector<8x1xf32>
    %cst_10 = arith.constant 1.000000e-16 : f32
    %22 = vector.broadcast %cst_10 : f32 to vector<8x1xf32>
    %23 = arith.maximumf %21, %22 : vector<8x1xf32>
    %24 = math.rsqrt %23 : vector<8x1xf32>
    %25 = arith.mulf %8, %24 : vector<8x1xf32>
    %26 = arith.mulf %14, %20 : vector<8x1xf32>
    %cst_11 = arith.constant 1.000000e-16 : f32
    %27 = vector.broadcast %cst_11 : f32 to vector<8x1xf32>
    %28 = arith.maximumf %26, %27 : vector<8x1xf32>
    %29 = math.rsqrt %28 : vector<8x1xf32>
    %30 = arith.mulf %11, %29 : vector<8x1xf32>
    %31 = arith.subf %30, %25 : vector<8x1xf32>
    %cst_12 = arith.constant 14.2857141 : f32
    %32 = vector.broadcast %cst_12 : f32 to vector<8x1xf32>
    %33 = arith.mulf %31, %32 : vector<8x1xf32>
    %cst_13 = arith.constant 0.000000e+00 : f32
    %34 = vector.broadcast %cst_13 : f32 to vector<8x1xf32>
    %35 = arith.maximumf %33, %34 : vector<8x1xf32>
    %36 = math.absf %33 : vector<8x1xf32>
    %cst_14 = arith.constant 0.000000e+00 : f32
    %37 = vector.broadcast %cst_14 : f32 to vector<8x1xf32>
    %38 = arith.subf %37, %36 : vector<8x1xf32>
    %39 = math.exp %38 : vector<8x1xf32>
    %cst_15 = arith.constant 1.000000e+00 : f32
    %40 = vector.broadcast %cst_15 : f32 to vector<8x1xf32>
    %41 = arith.addf %40, %39 : vector<8x1xf32>
    %42 = math.log %41 : vector<8x1xf32>
    %43 = arith.addf %35, %42 : vector<8x1xf32>
    %c8_i32 = arith.constant 8 : i32
    %44 = arith.muli %arg0, %c8_i32 : i32
    %45 = tpu.iota {dimensions = array<i32: 0>} : vector<8x1xi32>
    %46 = vector.broadcast %44 : i32 to vector<8x1xi32>
    %47 = arith.addi %46, %45 : vector<8x1xi32>
    %c8_i32_16 = arith.constant 8 : i32
    %48 = vector.broadcast %c8_i32_16 : i32 to vector<8x1xi32>
    %49 = arith.cmpi slt, %47, %48 : vector<8x1xi32>
    %cst_17 = arith.constant 0.000000e+00 : f32
    %50 = vector.broadcast %cst_17 : f32 to vector<8x1xf32>
    %51 = arith.select %49, %43, %50 : vector<8x1xi1>, vector<8x1xf32>
    %c0_18 = arith.constant 0 : index
    %c0_19 = arith.constant 0 : index
    %52 = vector.load %arg5[%c0_18, %c0_19] : memref<1x1xf32, #tpu.memory_space<vmem>>, vector<1x1xf32>
    %cst_20 = arith.constant dense<0.000000e+00> : vector<1xf32>
    %53 = vector.multi_reduction <add>, %51, %cst_20 [0] : vector<8x1xf32> to vector<1xf32>
    %54 = vector.shape_cast %53 : vector<1xf32> to vector<1x1xf32>
    %55 = arith.addf %52, %54 : vector<1x1xf32>
    %c0_21 = arith.constant 0 : index
    %c0_22 = arith.constant 0 : index
    %56 = vector.load %arg5[%c0_21, %c0_22] : memref<1x1xf32, #tpu.memory_space<vmem>>, vector<1x1xf32>
    tpu.vector_store %arg5[%c0_21, %c0_22], %55 {strides = array<i32>} : memref<1x1xf32, #tpu.memory_space<vmem>>, vector<1x1xf32>,
    %c0_i32_23 = arith.constant 0 : i32
    %57 = arith.cmpi eq, %arg0, %c0_i32_23 : i32
    %58 = arith.extui %57 : i1 to i32
    %c0_i32_24 = arith.constant 0 : i32
    %59 = arith.cmpi ne, %58, %c0_i32_24 : i32
    scf.if %59 {
      %c0_25 = arith.constant 0 : index
      %c0_26 = arith.constant 0 : index
      %60 = vector.load %arg5[%c0_25, %c0_26] : memref<1x1xf32, #tpu.memory_space<vmem>>, vector<1x1xf32>
      %cst_27 = arith.constant 1.250000e-01 : f32
      %61 = vector.broadcast %cst_27 : f32 to vector<1x1xf32>
      %62 = arith.mulf %60, %61 : vector<1x1xf32>
      %c0_28 = arith.constant 0 : index
      %c0_29 = arith.constant 0 : index
      %63 = vector.load %arg4[%c0_28, %c0_29] : memref<1x1xf32, #tpu.memory_space<vmem>>, vector<1x1xf32>
      tpu.vector_store %arg4[%c0_28, %c0_29], %62 {strides = array<i32>} : memref<1x1xf32, #tpu.memory_space<vmem>>, vector<1x1xf32>,
    } else {
    }
    return
  }
  func.func @transform_0(%arg0: i32) -> (i32, i32) {
    %c0_i32 = arith.constant 0 : i32
    %c0_i32_0 = arith.constant 0 : i32
    return %arg0, %c0_i32 : i32, i32
  }
  func.func @transform_1(%arg0: i32) -> (i32, i32) {
    %c0_i32 = arith.constant 0 : i32
    %c0_i32_0 = arith.constant 0 : i32
    return %arg0, %c0_i32 : i32, i32
  }
  func.func @transform_2(%arg0: i32) -> (i32, i32) {
    %c0_i32 = arith.constant 0 : i32
    %c0_i32_0 = arith.constant 0 : i32
    return %arg0, %c0_i32 : i32, i32
  }
  func.func @transform_3(%arg0: i32) -> (i32, i32) {
    %c0_i32 = arith.constant 0 : i32
    %c0_i32_0 = arith.constant 0 : i32
    %c0_i32_1 = arith.constant 0 : i32
    return %c0_i32, %c0_i32_0 : i32, i32
  }
}

</mosaic_0001>

<bundles_post_ra>
// kernel: tpu_custom_call.1
= control target key start
LH: loop header
LB: loop body
LE: loop exit
PB: predicated region body
PF: predicated region fallthrough
CT: control target
= control target key end

     0   :  { %8 = vsyncpa [#allocation4], 0  ;;  %s319_s0 = inlined_call_operand.hbm [shape: f32[8,32], index: 0, kind: input, shape index: {}]   ;;  %s320_s1 = inlined_call_operand.hbm [shape: f32[8,32], index: 1, kind: input, shape index: {}]   ;;  %s321_s2 = inlined_call_operand.hbm [shape: f32[8,32], index: 2, kind: input, shape index: {}]   ;;  %s322_s3 = inlined_call_operand.hbm [shape: f32[1,1], index: 3, kind: output, shape index: {}]  }
   0x1   :  { %9 = vsyncpa [#allocation7], 0  ;;  %s27_s14 = sshll.u32 %s320_s1, 4  ;;  %s28_s14 = int_to_ptr.hbm [resolvable:$true] %s27_s14 }
   0x2   :  { %10 = vsyncpa [#allocation5], 0  ;;  %s279_s15 = smov [#allocation6]   ;;  %s16_s19 = sshll.u32 %s319_s0, 4  ;;  %s17_s19 = int_to_ptr.hbm [resolvable:$true] %s16_s19 }
   0x3   :  { %s29_s16 = sshll.u32 %s279_s15, 4  ;;  %s280_s20 = smov [#allocation3]   ;;  %s30_s16 = int_to_ptr.vmem [resolvable:$true] %s29_s16 }
   0x4   :  { %32 = dma.hbm_to_vmem [thread:$0]  %s28_s14, 128, %s30_s16, [#allocation7]  }
   0x5   :  { %s18_s21 = sshll.u32 %s280_s20, 4  ;;  %s38_s24 = sshll.u32 %s321_s2, 4  ;;  %s19_s21 = int_to_ptr.vmem [resolvable:$true] %s18_s21  ;;  %s39_s24 = int_to_ptr.hbm [resolvable:$true] %s38_s24 }
   0x6   :  { %21 = dma.hbm_to_vmem [thread:$0]  %s17_s19, 128, %s19_s21, [#allocation4]  }
   0x7   :  { %s281_s1 = smov [#allocation8]  }
   0x8   :  { %s40_s25 = sshll.u32 %s281_s1, 4  ;;  %s41_s25 = int_to_ptr.vmem [resolvable:$true] %s40_s25 }
   0x9   :  { %43 = dma.hbm_to_vmem [thread:$0]  %s39_s24, 128, %s41_s25, [#allocation7]  }
   0xa   :  { %273 = dma.done.wait [#allocation4], 128  }
   0xb   :  { %274 = vsyncadd [#allocation4], 4294967168 }
   0xc   :  { %275 = dma.done.wait [#allocation7], 256  }
   0xd   :  { %276 = vsyncadd [#allocation7], 4294967040  ;;  %v64_v0 = vld [vmem:[#allocation8] sm:$0xff]  ;;  %vm66_vm0 = vcmask 261120   ;;  %v62_v1 = vld [vmem:[#allocation3] sm:$0xff]  ;;  %vm60_vm7 = vcmask 0  }
   0xe   :  { %v82_v2 = vmul.f32 %v64_v0, %v64_v0  ;;  %v74_v3 = vmul.f32 %v62_v1, %v62_v1  ;;  %v70_v4 = vmul.f32 %v64_v0, %v62_v1  ;;  %v63_v5 = vld [vmem:[#allocation6] sm:$0xff]  ;;  %v282_v40 = vmov 0.0   ;;  %s283_s0 = smov [#allocation9]   ;;  %s153_s28 = sshll.u32 %s322_s3, 4  ;;  %s154_s28 = int_to_ptr.hbm [resolvable:$true] %s153_s28 }
   0xf   :  { %v78_v9 = vmul.f32 %v63_v5, %v63_v5  ;;  %v65_v10 = vmul.f32 %v63_v5, %v62_v1  ;;  %61 = vst.msk [vmem:[#allocation2] sm:$0x1] %vm60_vm7, %v282_v40  ;;  %s151_s2 = sshll.u32 %s283_s0, 4  ;;  %s152_s2 = int_to_ptr.vmem [resolvable:$true] %s151_s2 }
  0x10   :  { %v83_v6 = vsel %vm66_vm0, %v82_v2, 0.0  ;;  %v75_v7 = vsel %vm66_vm0, %v74_v3, 0.0  ;;  %v71_v8 = vsel %vm66_vm0, %v70_v4, 0.0 }
  0x11   :  { %84 = vadd.xlane.f32.xlu1 %v83_v6  ;;  %76 = vadd.xlane.f32.xlu0 %v75_v7  ;;  %v79_v11 = vsel %vm66_vm0, %v78_v9, 0.0  ;;  %v67_v12 = vsel %vm66_vm0, %v65_v10, 0.0 }
  0x12   :  { %72 = vadd.xlane.f32.xlu2 %v71_v8 }
  0x16   :  { %v130_v55 = vld [vmem:[#allocation2] sm:$0x1] }
  0x19   :  { %80 = vadd.xlane.f32.xlu0 %v79_v11  ;;  %68 = vadd.xlane.f32.xlu1 %v67_v12 }
  0x84   :  { %v85_v13 = vpop.xlane.xlu1 %84  ;;  %v77_v14 = vpop.xlane.xlu0 %76 }
  0x85   :  { %v99_v15 = vmul.f32 %v85_v13, %v77_v14  ;;  %v73_v32 = vpop.xlane.xlu2 %72 }
  0x87   :  { %v100_v16 = vmax.f32 %v99_v15, 1e-16 }
  0x89   :  { %169 = vrsqrt.f32 %v100_v16  ;;  %vm107_vm2 = vweird.f32 %v100_v16 }
  0x8c   :  { %v81_v17 = vpop.xlane.xlu0 %80  ;;  %v69_v34 = vpop.xlane.xlu1 %68 }
  0x8d   :  { %v86_v18 = vmul.f32 %v81_v17, %v77_v14 }
  0x8f   :  { %v170_v19 = vpop.eup %169  ;;  %v87_v20 = vmax.f32 %v86_v18, 1e-16 }
  0x90   :  { %v102_v21 = vmul.f32 %v170_v19, %v100_v16  ;;  %vm108_vm1 = vweird.f32 %v170_v19 }
  0x91   :  { %171 = vrsqrt.f32 %v87_v20  ;;  %vm109_vm4 = vmor %vm107_vm2, %vm108_vm1  ;;  %vm94_vm5 = vweird.f32 %v87_v20 }
  0x92   :  { %v103_v22 = vmul.f32 %v170_v19, %v102_v21 }
  0x94   :  { %v104_v23 = vmul.f32 0.5, %v103_v22 }
  0x96   :  { %v105_v26 = vsub.f32 1.5, %v104_v23 }
  0x97   :  { %v172_v24 = vpop.eup %171 }
  0x98   :  { %v89_v25 = vmul.f32 %v172_v24, %v87_v20  ;;  %v106_v29 = vmul.f32 %v170_v19, %v105_v26  ;;  %vm95_vm3 = vweird.f32 %v172_v24 }
  0x99   :  { %vm96_vm6 = vmor %vm94_vm5, %vm95_vm3 }
  0x9a   :  { %v90_v27 = vmul.f32 %v172_v24, %v89_v25  ;;  %v110_v31 = vsel %vm109_vm4, %v170_v19, %v106_v29 }
  0x9b   :  { %v111_v36 = vmul.f32 %v110_v31, %v73_v32 }
  0x9c   :  { %v91_v28 = vmul.f32 0.5, %v90_v27 }
  0x9e   :  { %v92_v30 = vsub.f32 1.5, %v91_v28 }
  0xa0   :  { %v93_v33 = vmul.f32 %v172_v24, %v92_v30 }
  0xa2   :  { %v97_v35 = vsel %vm96_vm6, %v172_v24, %v93_v33 }
  0xa3   :  { %v98_v37 = vmul.f32 %v97_v35, %v69_v34 }
  0xa5   :  { %v112_v38 = vsub.f32 %v111_v36, %v98_v37 }
  0xa7   :  { %v113_v39 = vmul.f32 14.285714, %v112_v38 }
  0xa9   :  { %v115_v41 = vand.u32 2147483647, %v113_v39  ;;  %v114_v47 = vmax.f32 %v113_v39, 0.0 }
  0xab   :  { %v116_v42 = vsub.f32 0.0, %v115_v41 }
  0xad   :  { %v117_v43 = vmul.f32 1.442695, %v116_v42 }
  0xaf   :  { %173 = vpow2.f32 %v117_v43 }
  0xb5   :  { %v174_v44 = vpop.eup %173 }
  0xb6   :  { %v119_v45 = vadd.f32 1.0, %v174_v44 }
  0xb8   :  { %175 = vlog2.f32 %v119_v45 }
  0xbe   :  { %v176_v46 = vpop.eup %175 }
  0xbf   :  { %v121_v48 = vmul.f32 0.6931472, %v176_v46 }
  0xc1   :  { %v122_v49 = vadd.f32 %v121_v48, %v114_v47 }
  0xc3   :  { %v131_v50 = vrot.slane %v122_v49, 4 }
  0xc5   :  { %v132_v51 = vadd.f32 %v131_v50, %v122_v49 }
  0xc7   :  { %v133_v52 = vrot.slane %v132_v51, 2 }
  0xc9   :  { %v134_v53 = vadd.f32 %v133_v52, %v132_v51 }
  0xcb   :  { %v135_v54 = vrot.slane %v134_v53, 1 }
  0xcd   :  { %v136_v56 = vadd.f32 %v135_v54, %v134_v53 }
  0xcf   :  { %v137_v57 = vadd.f32 %v136_v56, %v130_v55 }
  0xd1   :  { %139 = vst.msk [vmem:[#allocation2] sm:$0x1] %vm60_vm7, %v137_v57 }
  0xd8   :  { %v143_v58 = vld [vmem:[#allocation2] sm:$0x1] }
  0xd9   :  { %v144_v59 = vmul.f32 0.125, %v143_v58 }
  0xdb   :  { %145 = vst.msk [vmem:[#allocation9] sm:$0x1] %vm60_vm7, %v144_v59 }
  0xdc   :  { %156 = dma.vmem_to_hbm [thread:$0]  %s152_s2, 16, %s154_s28, [#allocation5]  }
  0xdd   :  { %277 = dma.done.wait [#allocation5], 16  }
  0xde   :  { %278 = vsyncadd [#allocation5], 4294967280 }
  0xdf   :  { %161 = vsyncpa [#allocation4], 1 }
  0xe0   :  { %162 = vsyncpa [#allocation7], 1 }
  0xe1   :  { %163 = vsyncpa [#allocation5], 1 }

</bundles_post_ra>
